<compile_context>
chip_gen: v7x
topology: tpu7x:2x2x1
jax: 0.10.0
libtpu: 0.0.40
codegen_flags: <defaults>
</compile_context>

<pallas_src>
import functools

import jax
import jax.numpy as jnp
from jax.experimental import pallas as pl
from jax.experimental.pallas import tpu as pltpu


def _round_up(a: int, m: int) -> int:
    return (a + m - 1) // m * m


def policy_net_kernel(x_ref, w1_ref, b1_ref, w2_ref, b2_ref, wh_ref, bh_ref,
                      out_ref):
    x = x_ref[...]

    # fc1 + relu
    h1 = jnp.dot(x, w1_ref[...], preferred_element_type=jnp.float32) + b1_ref[...]
    h1 = jnp.maximum(h1, 0.0)

    # fc2 + relu
    h2 = jnp.dot(h1, w2_ref[...], preferred_element_type=jnp.float32) + b2_ref[...]
    h2 = jnp.maximum(h2, 0.0)

    # Fused heads: [pi | v] in one matmul -> one (TB, act_dim+1) store.
    out = jnp.dot(h2, wh_ref[...], preferred_element_type=jnp.float32) + bh_ref[...]
    out_ref[...] = out.astype(out_ref.dtype)


@functools.partial(jax.jit, static_argnames=("max_batch_tile",))
def policy_net_forward(x, params, *, max_batch_tile: int = 512):
    """x: (B, obs_dim) float32. Returns (logits (B, act_dim), value (B, 1))."""
    B, obs_dim = x.shape
    hidden_dim = params["w1"].shape[1]
    act_dim = params["wpi"].shape[1]
    head_dim = act_dim + 1

    # Fuse the pi and v heads once at the wrapper level.
    w_head = jnp.concatenate([params["wpi"], params["wv"]], axis=1)  # (hid, act+1)
    b_head = jnp.concatenate([params["bpi"], params["bv"]], axis=1)  # (1, act+1)

    # Batch tile: multiple of 8 sublanes, capped so (double-buffered) tiles stay
    # comfortably inside every generation's scoped VMEM.
    TB = min(max_batch_tile, _round_up(B, 8))
    B_pad = _round_up(B, TB)
    if B_pad != B:
        x = jnp.pad(x, ((0, B_pad - B), (0, 0)))
    grid = (B_pad // TB,)

    # Resident weights/biases: same (0, 0) block at every grid step.
    def resident(shape):
        return pl.BlockSpec(shape, lambda i: (0, 0))

    flops = 2 * B_pad * (obs_dim * hidden_dim
                         + hidden_dim * hidden_dim
                         + hidden_dim * head_dim)
    bytes_accessed = 4 * (B_pad * obs_dim            # streamed x
                          + B_pad * head_dim         # streamed fused output
                          + obs_dim * hidden_dim + hidden_dim
                          + hidden_dim * hidden_dim + hidden_dim
                          + hidden_dim * head_dim + head_dim)

    fused = pl.pallas_call(
        policy_net_kernel,
        out_shape=jax.ShapeDtypeStruct((B_pad, head_dim), jnp.float32),
        grid_spec=pltpu.PrefetchScalarGridSpec(
            num_scalar_prefetch=0,
            grid=grid,
            in_specs=[
                pl.BlockSpec((TB, obs_dim), lambda i: (i, 0)),   # x: streamed
                resident((obs_dim, hidden_dim)),                 # w1
                resident((1, hidden_dim)),                       # b1
                resident((hidden_dim, hidden_dim)),              # w2
                resident((1, hidden_dim)),                       # b2
                resident((hidden_dim, head_dim)),                # w_head
                resident((1, head_dim)),                         # b_head
            ],
            out_specs=pl.BlockSpec((TB, head_dim), lambda i: (i, 0)),
        ),
        compiler_params=pltpu.CompilerParams(
            dimension_semantics=("parallel",),
        ),
        cost_estimate=pl.CostEstimate(
            flops=flops, transcendentals=0, bytes_accessed=bytes_accessed),
    )(
        x,
        params["w1"], params["b1"],
        params["w2"], params["b2"],
        w_head, b_head,
    )

    logits = fused[:B, :act_dim]
    value = fused[:B, act_dim:]
    return logits, value


def init_policy_net_params(key, obs_dim, hidden_dim, act_dim):
    """Deterministic init mirroring PolicyNet.__init__ shapes.

    Weights stored as (in, out); biases as (1, out) for 2-D VMEM layout.
    """
    ks = jax.random.split(key, 8)
    scale = 0.1
    return {
        "w1":  scale * jax.random.normal(ks[0], (obs_dim, hidden_dim), jnp.float32),
        "b1":  scale * jax.random.normal(ks[1], (1, hidden_dim), jnp.float32),
        "w2":  scale * jax.random.normal(ks[2], (hidden_dim, hidden_dim), jnp.float32),
        "b2":  scale * jax.random.normal(ks[3], (1, hidden_dim), jnp.float32),
        "wpi": scale * jax.random.normal(ks[4], (hidden_dim, act_dim), jnp.float32),
        "bpi": scale * jax.random.normal(ks[5], (1, act_dim), jnp.float32),
        "wv":  scale * jax.random.normal(ks[6], (hidden_dim, 1), jnp.float32),
        "bv":  scale * jax.random.normal(ks[7], (1, 1), jnp.float32),
    }


def _reference(x, params):
    h1 = jnp.maximum(x @ params["w1"] + params["b1"], 0.0)
    h2 = jnp.maximum(h1 @ params["w2"] + params["b2"], 0.0)
    return h2 @ params["wpi"] + params["bpi"], h2 @ params["wv"] + params["bv"]


if __name__ == "__main__":
    OBS_DIM, HIDDEN_DIM, ACT_DIM = 16, 32, 4

    key = jax.random.PRNGKey(0)
    k_params, k_small, k_big = jax.random.split(key, 3)
    params = init_policy_net_params(k_params, OBS_DIM, HIDDEN_DIM, ACT_DIM)

    # Small batch (single grid step).
    x_small = jax.random.normal(k_small, (8, OBS_DIM), jnp.float32)
    logits, value = policy_net_forward(x_small, params)
    jax.block_until_ready((logits, value))
    ref_logits, ref_value = _reference(x_small, params)
    assert logits.shape == (8, ACT_DIM) and value.shape == (8, 1)
    assert jnp.allclose(logits, ref_logits, atol=1e-4, rtol=1e-5)
    assert jnp.allclose(value, ref_value, atol=1e-4, rtol=1e-5)

    # Rollout-sized, non-multiple batch: exercises batch tiling + padding.
    x_big = jax.random.normal(k_big, (1000, OBS_DIM), jnp.float32)
    logits_b, value_b = policy_net_forward(x_big, params)
    jax.block_until_ready((logits_b, value_b))
    ref_logits_b, ref_value_b = _reference(x_big, params)
    assert logits_b.shape == (1000, ACT_DIM) and value_b.shape == (1000, 1)
    assert jnp.allclose(logits_b, ref_logits_b, atol=1e-4, rtol=1e-5)
    assert jnp.allclose(value_b, ref_value_b, atol=1e-4, rtol=1e-5)

    print("KERNEL_OK")
</pallas_src>

<mosaic_0001>
module attributes {stable_mosaic.version = 11 : i64} {
  func.func @policy_net_kernel(%arg0: i32, %arg1: memref<8x16xf32, #tpu.memory_space<vmem>>, %arg2: memref<16x32xf32, #tpu.memory_space<vmem>>, %arg3: memref<1x32xf32, #tpu.memory_space<vmem>>, %arg4: memref<32x32xf32, #tpu.memory_space<vmem>>, %arg5: memref<1x32xf32, #tpu.memory_space<vmem>>, %arg6: memref<32x5xf32, #tpu.memory_space<vmem>>, %arg7: memref<1x5xf32, #tpu.memory_space<vmem>>, %arg8: memref<8x5xf32, #tpu.memory_space<vmem>>) attributes {dimension_semantics = [#tpu.dimension_semantics<parallel>], iteration_bounds = array<i64: 1>, scalar_prefetch = 0 : i64, scratch_operands = 0 : i64, tpu.core_type = #tpu.core_type<tc>, window_params = [{transform_indices = @transform_0, window_bounds = array<i64: 8, 16>}, {pipeline_mode = #tpu.pipeline_mode<synchronous>, transform_indices = @transform_1, window_bounds = array<i64: 16, 32>}, {pipeline_mode = #tpu.pipeline_mode<synchronous>, transform_indices = @transform_2, window_bounds = array<i64: 1, 32>}, {pipeline_mode = #tpu.pipeline_mode<synchronous>, transform_indices = @transform_3, window_bounds = array<i64: 32, 32>}, {pipeline_mode = #tpu.pipeline_mode<synchronous>, transform_indices = @transform_4, window_bounds = array<i64: 1, 32>}, {pipeline_mode = #tpu.pipeline_mode<synchronous>, transform_indices = @transform_5, window_bounds = array<i64: 32, 5>}, {pipeline_mode = #tpu.pipeline_mode<synchronous>, transform_indices = @transform_6, window_bounds = array<i64: 1, 5>}, {transform_indices = @transform_7, window_bounds = array<i64: 8, 5>}]} {
    %c0 = arith.constant 0 : index
    %c0_0 = arith.constant 0 : index
    %0 = vector.load %arg1[%c0, %c0_0] : memref<8x16xf32, #tpu.memory_space<vmem>>, vector<8x16xf32>
    %c0_1 = arith.constant 0 : index
    %c0_2 = arith.constant 0 : index
    %1 = vector.load %arg2[%c0_1, %c0_2] : memref<16x32xf32, #tpu.memory_space<vmem>>, vector<16x32xf32>
    %cst = arith.constant dense<0.000000e+00> : vector<8x32xf32>
    %2 = tpu.matmul %0, %1, %cst {dimension_numbers = #tpu.dot_dimension_numbers<[1], [0], [0], [1], [0, 0, 1, 1], [], []>} : vector<8x16xf32>, vector<16x32xf32>, vector<8x32xf32> -> vector<8x32xf32>
    %c0_3 = arith.constant 0 : index
    %c0_4 = arith.constant 0 : index
    %3 = vector.load %arg3[%c0_3, %c0_4] : memref<1x32xf32, #tpu.memory_space<vmem>>, vector<1x32xf32>
    %4 = vector.broadcast %3 : vector<1x32xf32> to vector<8x32xf32>
    %5 = arith.addf %2, %4 : vector<8x32xf32>
    %cst_5 = arith.constant 0.000000e+00 : f32
    %6 = vector.broadcast %cst_5 : f32 to vector<8x32xf32>
    %7 = arith.maximumf %5, %6 : vector<8x32xf32>
    %c0_6 = arith.constant 0 : index
    %c0_7 = arith.constant 0 : index
    %8 = vector.load %arg4[%c0_6, %c0_7] : memref<32x32xf32, #tpu.memory_space<vmem>>, vector<32x32xf32>
    %cst_8 = arith.constant dense<0.000000e+00> : vector<8x32xf32>
    %9 = tpu.matmul %7, %8, %cst_8 {dimension_numbers = #tpu.dot_dimension_numbers<[1], [0], [0], [1], [0, 0, 1, 1], [], []>} : vector<8x32xf32>, vector<32x32xf32>, vector<8x32xf32> -> vector<8x32xf32>
    %c0_9 = arith.constant 0 : index
    %c0_10 = arith.constant 0 : index
    %10 = vector.load %arg5[%c0_9, %c0_10] : memref<1x32xf32, #tpu.memory_space<vmem>>, vector<1x32xf32>
    %11 = vector.broadcast %10 : vector<1x32xf32> to vector<8x32xf32>
    %12 = arith.addf %9, %11 : vector<8x32xf32>
    %cst_11 = arith.constant 0.000000e+00 : f32
    %13 = vector.broadcast %cst_11 : f32 to vector<8x32xf32>
    %14 = arith.maximumf %12, %13 : vector<8x32xf32>
    %c0_12 = arith.constant 0 : index
    %c0_13 = arith.constant 0 : index
    %15 = vector.load %arg6[%c0_12, %c0_13] : memref<32x5xf32, #tpu.memory_space<vmem>>, vector<32x5xf32>
    %cst_14 = arith.constant dense<0.000000e+00> : vector<8x5xf32>
    %16 = tpu.matmul %14, %15, %cst_14 {dimension_numbers = #tpu.dot_dimension_numbers<[1], [0], [0], [1], [0, 0, 1, 1], [], []>} : vector<8x32xf32>, vector<32x5xf32>, vector<8x5xf32> -> vector<8x5xf32>
    %c0_15 = arith.constant 0 : index
    %c0_16 = arith.constant 0 : index
    %17 = vector.load %arg7[%c0_15, %c0_16] : memref<1x5xf32, #tpu.memory_space<vmem>>, vector<1x5xf32>
    %18 = vector.broadcast %17 : vector<1x5xf32> to vector<8x5xf32>
    %19 = arith.addf %16, %18 : vector<8x5xf32>
    %c0_17 = arith.constant 0 : index
    %c0_18 = arith.constant 0 : index
    %20 = vector.load %arg8[%c0_17, %c0_18] : memref<8x5xf32, #tpu.memory_space<vmem>>, vector<8x5xf32>
    tpu.vector_store %arg8[%c0_17, %c0_18], %19 {strides = array<i32>} : memref<8x5xf32, #tpu.memory_space<vmem>>, vector<8x5xf32>,
    return
  }
  func.func @transform_0(%arg0: i32) -> (i32, i32) {
    %c0_i32 = arith.constant 0 : i32
    %c0_i32_0 = arith.constant 0 : i32
    return %arg0, %c0_i32 : i32, i32
  }
  func.func @transform_1(%arg0: i32) -> (i32, i32) {
    %c0_i32 = arith.constant 0 : i32
    %c0_i32_0 = arith.constant 0 : i32
    %c0_i32_1 = arith.constant 0 : i32
    return %c0_i32, %c0_i32_0 : i32, i32
  }
  func.func @transform_2(%arg0: i32) -> (i32, i32) {
    %c0_i32 = arith.constant 0 : i32
    %c0_i32_0 = arith.constant 0 : i32
    %c0_i32_1 = arith.constant 0 : i32
    return %c0_i32, %c0_i32_0 : i32, i32
  }
  func.func @transform_3(%arg0: i32) -> (i32, i32) {
    %c0_i32 = arith.constant 0 : i32
    %c0_i32_0 = arith.constant 0 : i32
    %c0_i32_1 = arith.constant 0 : i32
    return %c0_i32, %c0_i32_0 : i32, i32
  }
  func.func @transform_4(%arg0: i32) -> (i32, i32) {
    %c0_i32 = arith.constant 0 : i32
    %c0_i32_0 = arith.constant 0 : i32
    %c0_i32_1 = arith.constant 0 : i32
    return %c0_i32, %c0_i32_0 : i32, i32
  }
  func.func @transform_5(%arg0: i32) -> (i32, i32) {
    %c0_i32 = arith.constant 0 : i32
    %c0_i32_0 = arith.constant 0 : i32
    %c0_i32_1 = arith.constant 0 : i32
    return %c0_i32, %c0_i32_0 : i32, i32
  }
  func.func @transform_6(%arg0: i32) -> (i32, i32) {
    %c0_i32 = arith.constant 0 : i32
    %c0_i32_0 = arith.constant 0 : i32
    %c0_i32_1 = arith.constant 0 : i32
    return %c0_i32, %c0_i32_0 : i32, i32
  }
  func.func @transform_7(%arg0: i32) -> (i32, i32) {
    %c0_i32 = arith.constant 0 : i32
    %c0_i32_0 = arith.constant 0 : i32
    return %arg0, %c0_i32 : i32, i32
  }
}

</mosaic_0001>

<bundles_post_ra>
// kernel: policy_net_forward.1
= control target key start
LH: loop header
LB: loop body
LE: loop exit
PB: predicated region body
PF: predicated region fallthrough
CT: control target
= control target key end

     0   :  { %v353_v0 = vmov 0.0|0.0   ;;  %vm354_vm0 = vmmov 0   ;;  %v355_v3 = vmov 0.0   ;;  %vm36_vm1 = vcmask 130048   ;;  %s444_s1 = inlined_call_operand.vmem [shape: f32[16,32], index: 1, kind: input, shape index: {}]   ;;  %s445_s3 = inlined_call_operand.vmem [shape: f32[32,32], index: 3, kind: input, shape index: {}]   ;;  %s446_s0 = inlined_call_operand.vmem [shape: f32[8,16], index: 0, kind: input, shape index: {}]   ;;  %s447_s5 = inlined_call_operand.vmem [shape: f32[32,5], index: 5, kind: input, shape index: {}]   ;;  %s448_s2 = inlined_call_operand.vmem [shape: f32[1,32], index: 2, kind: input, shape index: {}]   ;;  %s449_s4 = inlined_call_operand.vmem [shape: f32[1,32], index: 4, kind: input, shape index: {}]   ;;  %s450_s6 = inlined_call_operand.vmem [shape: f32[1,5], index: 6, kind: input, shape index: {}]   ;;  %s451_s7 = inlined_call_operand.vmem [shape: f32[8,5], index: 7, kind: output, shape index: {}]  }
   0x1   :  { %335 = vmatprep.subr.bf16.mxu0 %v353_v0  ;;  %v27_v1 = vld [vmem:[%s444_s1] sm:$0xff]  ;;  %v28_v2 = vld [vmem:[%s444_s1 + $0x8] sm:$0xff]  ;;  %310 = vmatprep.mubr.msk.f32.mxu0 %vm354_vm0, %v355_v3  ;;  %v113_v9 = vld [vmem:[%s445_s3 + $0x10] sm:$0xff]  ;;  %vm122_vm2 = vcmask 261120   ;;  %vm281_vm3 = vcmask 39936  }
   0x2   :  { %v336_v4 = vpack.c.bf16 %v28_v2, %v27_v1  ;;  %338 = vmatprep.subr.bf16.mxu1 %v353_v0  ;;  %v111_v5 = vld [vmem:[%s445_s3] sm:$0xff]  ;;  %v112_v6 = vld [vmem:[%s445_s3 + $0x8] sm:$0xff]  ;;  %321 = vmatprep.mubr.msk.f32.mxu1 %vm354_vm0, %v355_v3  ;;  %v114_v10 = vld [vmem:[%s445_s3 + $0x18] sm:$0xff] }
   0x3   :  { %v339_v7 = vpack.c.bf16 %v112_v6, %v111_v5  ;;  %v26_v8 = vld [vmem:[%s446_s0] sm:$0xff]  ;;  %v342_v11 = vpack.c.bf16 %v114_v10, %v113_v9  ;;  %v198_v13 = vld [vmem:[%s447_s5 + $0x8] sm:$0xff]  ;;  %v199_v20 = vld [vmem:[%s447_s5 + $0x10] sm:$0xff] }
   0x4   :  { %337 = vmatpush3.bf16.msra.mxu0 %v336_v4  ;;  %v197_v12 = vld [vmem:[%s447_s5] sm:$0xff]  ;;  %v200_v21 = vld [vmem:[%s447_s5 + $0x18] sm:$0xff] }
   0x5   :  { %340 = vmatpush3.bf16.msra.mxu1 %v339_v7  ;;  %344 = vmatprep.subr.bf16.mxu0 %v353_v0  ;;  %v345_v14 = vpack.c.bf16 %v198_v13, %v197_v12  ;;  %v287_v15 = vld [vmem:[%s448_s2] ss:$0 sm:$0xff]  ;;  %v348_v22 = vpack.c.bf16 %v200_v21, %v199_v20 }
   0x6   :  { %341 = vmatprep.subr.bf16.mxu1 %v353_v0  ;;  %v289_v23 = vld [vmem:[%s449_s4] ss:$0 sm:$0xff] }
   0x7   :  { %311 = vmatmul.mubr.msk.f32.vlgmr.msra.gmra.mrb[0].mxu0 %vm36_vm1, %v26_v8  ;;  %v291_v28 = vld [vmem:[%s450_s6] ss:$0 sm:$0xff] }
   0x8   :  { %332 = vmatprep.mubr.msk.f32.mxu0 %vm354_vm0, %v355_v3  ;;  %346 = vmatpush3.bf16.msra.mxu0 %v345_v14 }
   0x9   :  { %343 = vmatpush3.bf16.msra.mxu1 %v342_v11  ;;  %347 = vmatprep.subr.bf16.mxu0 %v353_v0 }
   0xc   :  { %349 = vmatpush3.bf16.msra.mxu0 %v348_v22 }
  0xda   :  { %v106_v16 = vpop.f32.mrb[0].mxu0 }
  0xdb   :  { %v107_v17 = vadd.f32 %v287_v15, %v106_v16  ;;  %v312_v18 = vpop.f32.mrb[1].mxu0 }
  0xdd   :  { %v110_v19 = vmax.f32 %v107_v17, 0.0 }
  0xdf   :  { %322 = vmatmul.mubr.msk.f32.vlgmr.msra.gmra.mrb[0].mxu1 %vm122_vm2, %v110_v19 }
 0x1b2   :  { %v192_v24 = vpop.f32.mrb[0].mxu1 }
 0x1b3   :  { %v193_v25 = vadd.f32 %v289_v23, %v192_v24  ;;  %v323_v26 = vpop.f32.mrb[1].mxu1 }
 0x1b5   :  { %v196_v27 = vmax.f32 %v193_v25, 0.0 }
 0x1b7   :  { %333 = vmatmul.mubr.msk.f32.vlgmr.msra.gmra.mrb[2].mxu0 %vm122_vm2, %v196_v27 }
 0x28a   :  { %v277_v29 = vpop.f32.mrb[2].mxu0 }
 0x28b   :  { %v278_v30 = vadd.f32 %v291_v28, %v277_v29  ;;  %v334_v31 = vpop.f32.mrb[3].mxu0 }
 0x28d   :  { %282 = vst.msk [vmem:[%s451_s7] sm:$0xff] %vm281_vm3, %v278_v30 }

</bundles_post_ra>
